<compile_context>
chip_gen: v7x
topology: tpu7x:2x2x1
jax: 0.10.0
libtpu: 0.0.40
codegen_flags: <defaults>
</compile_context>

<pallas_src>
import functools

import jax
import jax.numpy as jnp
from jax import lax
from jax.experimental import pallas as pl
from jax.experimental.pallas import tpu as pltpu

N_EMBED = 384          # n_embed from the module
HEAD_SIZE = 64         # head_size (= n_embed // n_head in the parent model)
CONTEXT_LEN = 256      # context_length (T must be <= this)
LANE = 128             # TPU lane width


def head_kernel(x_ref, wqkv_ref, o_ref, *, hsp, n_embed):
    """One batch element: causal single-head attention on (T, C)."""
    x = x_ref[0].astype(jnp.bfloat16)                      # (T, C)
    T = x.shape[0]

    # Fused Q/K/V projection: one (T, C) x (C, 3*hsp) bf16 MXU matmul.
    qkv = jnp.dot(x, wqkv_ref[...], preferred_element_type=jnp.float32)
    q = qkv[:, 0 * hsp:1 * hsp].astype(jnp.bfloat16)       # (T, hsp), cols >= HS are 0
    k = qkv[:, 1 * hsp:2 * hsp].astype(jnp.bfloat16)
    v = qkv[:, 2 * hsp:3 * hsp].astype(jnp.bfloat16)

    # scores = q @ k^T (contract last dims directly; no materialized transpose).
    # NOTE: the module scales by C**-0.5 where C == n_embed (not head_size).
    scale = jnp.float32(n_embed) ** -0.5
    scores = lax.dot_general(q, k, (((1,), (1,)), ((), ())),
                             preferred_element_type=jnp.float32) * scale

    # Causal mask, built once per invocation.
    rows = lax.broadcasted_iota(jnp.int32, (T, T), 0)
    cols = lax.broadcasted_iota(jnp.int32, (T, T), 1)
    scores = jnp.where(cols <= rows, scores, jnp.float32(-1e30))

    # Softmax in f32; denominator via EUP approx reciprocal (free slot).
    m = jnp.max(scores, axis=-1, keepdims=True)
    p = jnp.exp(scores - m)
    att = p * pl.reciprocal(jnp.sum(p, axis=-1, keepdims=True), approx=True)
    # dropout(att) is identity in eval mode.

    # out = att @ v, written lane-dense (T, hsp); padded columns stay zero.
    o_ref[0] = jnp.dot(att.astype(jnp.bfloat16), v,
                       preferred_element_type=jnp.float32)


def head_forward(x, w_query, w_key, w_value):
    """Pallas forward of Head.  Weights are stored (in_features, head_size),
    i.e. y = x @ W, equivalent to nn.Linear(bias=False) with W = W_pt.T."""
    B, T, C = x.shape
    HS = w_key.shape[1]
    HSP = ((HS + LANE - 1) // LANE) * LANE                 # pad head dim to 128 lanes

    # Pack [Q | K | V] into one bf16 weight with each projection zero-padded to
    # a lane-aligned 128-wide column block (one-time weight prep, outside kernel).
    wqkv = jnp.zeros((C, 3 * HSP), jnp.bfloat16)
    wqkv = wqkv.at[:, 0 * HSP:0 * HSP + HS].set(w_query.astype(jnp.bfloat16))
    wqkv = wqkv.at[:, 1 * HSP:1 * HSP + HS].set(w_key.astype(jnp.bfloat16))
    wqkv = wqkv.at[:, 2 * HSP:2 * HSP + HS].set(w_value.astype(jnp.bfloat16))

    out_padded = pl.pallas_call(
        functools.partial(head_kernel, hsp=HSP, n_embed=C),
        out_shape=jax.ShapeDtypeStruct((B, T, HSP), jnp.float32),
        grid=(B,),
        in_specs=[
            pl.BlockSpec((1, T, C), lambda b: (b, 0, 0)),
            pl.BlockSpec((C, 3 * HSP), lambda b: (0, 0)),
        ],
        out_specs=pl.BlockSpec((1, T, HSP), lambda b: (b, 0, 0)),
        compiler_params=pltpu.CompilerParams(
            dimension_semantics=("parallel",)),
    )(x, wqkv)
    return out_padded[..., :HS]


# ---------------------------------------------------------------------------
# Pure-JAX (f32) reference, mirroring the PyTorch module.
# ---------------------------------------------------------------------------
def head_ref(x, w_query, w_key, w_value):
    B, T, C = x.shape
    k = x @ w_key
    q = x @ w_query
    v = x @ w_value
    w = jnp.einsum("btd,bsd->bts", q, k) * (C ** -0.5)
    tril = jnp.tril(jnp.ones((T, T), bool))
    w = jnp.where(tril[None], w, -jnp.inf)
    w = jax.nn.softmax(w, axis=-1)
    # dropout identity in eval mode
    return jnp.einsum("bts,bsd->btd", w, v)


if __name__ == "__main__":
    key = jax.random.PRNGKey(0)
    kx, kq, kk, kv = jax.random.split(key, 4)

    B, T = 2, 64                      # T <= context_length
    wscale = N_EMBED ** -0.5          # ~ nn.Linear default init scale

    x = jax.random.normal(kx, (B, T, N_EMBED), jnp.float32)
    w_query = jax.random.normal(kq, (N_EMBED, HEAD_SIZE), jnp.float32) * wscale
    w_key = jax.random.normal(kk, (N_EMBED, HEAD_SIZE), jnp.float32) * wscale
    w_value = jax.random.normal(kv, (N_EMBED, HEAD_SIZE), jnp.float32) * wscale

    out = jax.block_until_ready(head_forward(x, w_query, w_key, w_value))
    assert out.shape == (B, T, HEAD_SIZE), out.shape

    ref = jax.block_until_ready(head_ref(x, w_query, w_key, w_value))
    max_err = float(jnp.max(jnp.abs(out - ref)))
    assert jnp.allclose(out, ref, atol=2e-2, rtol=2e-2), max_err

    print("KERNEL_OK")
</pallas_src>

<mosaic_0001>
module attributes {stable_mosaic.version = 11 : i64} {
  func.func @head_kernel(%arg0: i32, %arg1: memref<1x64x384xf32, #tpu.memory_space<vmem>>, %arg2: memref<384x384xbf16, #tpu.memory_space<vmem>>, %arg3: memref<1x64x128xf32, #tpu.memory_space<vmem>>) attributes {dimension_semantics = [#tpu.dimension_semantics<parallel>], iteration_bounds = array<i64: 2>, scalar_prefetch = 0 : i64, scratch_operands = 0 : i64, tpu.core_type = #tpu.core_type<tc>, window_params = [{transform_indices = @transform_0, window_bounds = array<i64: 1, 64, 384>}, {pipeline_mode = #tpu.pipeline_mode<synchronous>, transform_indices = @transform_1, window_bounds = array<i64: 384, 384>}, {transform_indices = @transform_2, window_bounds = array<i64: 1, 64, 128>}]} {
    %c0 = arith.constant 0 : index
    %c0_0 = arith.constant 0 : index
    %c0_1 = arith.constant 0 : index
    %0 = vector.load %arg1[%c0, %c0_0, %c0_1] : memref<1x64x384xf32, #tpu.memory_space<vmem>>, vector<1x64x384xf32>
    %1 = vector.shape_cast %0 : vector<1x64x384xf32> to vector<64x384xf32>
    %2 = arith.truncf %1 : vector<64x384xf32> to vector<64x384xbf16>
    %c0_2 = arith.constant 0 : index
    %c0_3 = arith.constant 0 : index
    %3 = vector.load %arg2[%c0_2, %c0_3] : memref<384x384xbf16, #tpu.memory_space<vmem>>, vector<384x384xbf16>
    %cst = arith.constant dense<0.000000e+00> : vector<64x384xf32>
    %4 = tpu.matmul %2, %3, %cst {dimension_numbers = #tpu.dot_dimension_numbers<[1], [0], [0], [1], [0, 0, 1, 1], [], []>} : vector<64x384xbf16>, vector<384x384xbf16>, vector<64x384xf32> -> vector<64x384xf32>
    %5 = vector.extract_strided_slice %4 {offsets = [0, 0], sizes = [64, 128], strides = [1, 1]} : vector<64x384xf32> to vector<64x128xf32>
    %6 = arith.truncf %5 : vector<64x128xf32> to vector<64x128xbf16>
    %7 = vector.extract_strided_slice %4 {offsets = [0, 128], sizes = [64, 128], strides = [1, 1]} : vector<64x384xf32> to vector<64x128xf32>
    %8 = arith.truncf %7 : vector<64x128xf32> to vector<64x128xbf16>
    %9 = vector.extract_strided_slice %4 {offsets = [0, 256], sizes = [64, 128], strides = [1, 1]} : vector<64x384xf32> to vector<64x128xf32>
    %10 = arith.truncf %9 : vector<64x128xf32> to vector<64x128xbf16>
    %cst_4 = arith.constant 3.840000e+02 : f32
    %cst_5 = arith.constant -5.000000e-01 : f32
    %11 = math.powf %cst_4, %cst_5 : f32
    %cst_6 = arith.constant dense<0.000000e+00> : vector<64x64xf32>
    %12 = tpu.matmul %6, %8, %cst_6 {dimension_numbers = #tpu.dot_dimension_numbers<[1], [1], [0], [0], [0, 0, 1, 0], [], []>} : vector<64x128xbf16>, vector<64x128xbf16>, vector<64x64xf32> -> vector<64x64xf32>
    %13 = vector.broadcast %11 : f32 to vector<64x64xf32>
    %14 = arith.mulf %12, %13 : vector<64x64xf32>
    %15 = tpu.iota {dimensions = array<i32: 0>} : vector<64x64xi32>
    %16 = tpu.iota {dimensions = array<i32: 1>} : vector<64x64xi32>
    %17 = arith.cmpi sle, %16, %15 : vector<64x64xi32>
    %cst_7 = arith.constant -1.000000e+30 : f32
    %18 = vector.broadcast %cst_7 : f32 to vector<64x64xf32>
    %19 = arith.select %17, %14, %18 : vector<64x64xi1>, vector<64x64xf32>
    %cst_8 = arith.constant dense<0xFF800000> : vector<64xf32>
    %20 = vector.multi_reduction <maximumf>, %19, %cst_8 [1] : vector<64x64xf32> to vector<64xf32>
    %21 = vector.shape_cast %20 : vector<64xf32> to vector<64x1xf32>
    %22 = vector.broadcast %21 : vector<64x1xf32> to vector<64x64xf32>
    %23 = arith.subf %19, %22 : vector<64x64xf32>
    %24 = math.exp %23 : vector<64x64xf32>
    %cst_9 = arith.constant dense<0.000000e+00> : vector<64xf32>
    %25 = vector.multi_reduction <add>, %24, %cst_9 [1] : vector<64x64xf32> to vector<64xf32>
    %26 = vector.shape_cast %25 : vector<64xf32> to vector<64x1xf32>
    %27 = tpu.reciprocal %26 {approx = true} : vector<64x1xf32> -> vector<64x1xf32>
    %28 = vector.broadcast %27 : vector<64x1xf32> to vector<64x64xf32>
    %29 = arith.mulf %24, %28 : vector<64x64xf32>
    %30 = arith.truncf %29 : vector<64x64xf32> to vector<64x64xbf16>
    %cst_10 = arith.constant dense<0.000000e+00> : vector<64x128xf32>
    %31 = tpu.matmul %30, %10, %cst_10 {dimension_numbers = #tpu.dot_dimension_numbers<[1], [0], [0], [1], [0, 0, 1, 1], [], []>} : vector<64x64xbf16>, vector<64x128xbf16>, vector<64x128xf32> -> vector<64x128xf32>
    %c0_11 = arith.constant 0 : index
    %c0_12 = arith.constant 0 : index
    %c0_13 = arith.constant 0 : index
    %32 = vector.load %arg3[%c0_11, %c0_12, %c0_13] : memref<1x64x128xf32, #tpu.memory_space<vmem>>, vector<1x64x128xf32>
    %33 = vector.shape_cast %32 : vector<1x64x128xf32> to vector<64x128xf32>
    %34 = vector.shape_cast %31 : vector<64x128xf32> to vector<1x64x128xf32>
    tpu.vector_store %arg3[%c0_11, %c0_12, %c0_13], %34 {strides = array<i32>} : memref<1x64x128xf32, #tpu.memory_space<vmem>>, vector<1x64x128xf32>,
    return
  }
  func.func @transform_0(%arg0: i32) -> (i32, i32, i32) {
    %c0_i32 = arith.constant 0 : i32
    %c0_i32_0 = arith.constant 0 : i32
    %c0_i32_1 = arith.constant 0 : i32
    return %arg0, %c0_i32, %c0_i32_0 : i32, i32, i32
  }
  func.func @transform_1(%arg0: i32) -> (i32, i32) {
    %c0_i32 = arith.constant 0 : i32
    %c0_i32_0 = arith.constant 0 : i32
    %c0_i32_1 = arith.constant 0 : i32
    return %c0_i32, %c0_i32_0 : i32, i32
  }
  func.func @transform_2(%arg0: i32) -> (i32, i32, i32) {
    %c0_i32 = arith.constant 0 : i32
    %c0_i32_0 = arith.constant 0 : i32
    %c0_i32_1 = arith.constant 0 : i32
    return %arg0, %c0_i32, %c0_i32_0 : i32, i32, i32
  }
}

</mosaic_0001>

<bundles_post_ra>
// kernel: tpu_custom_call.1
= control target key start
LH: loop header
LB: loop body
LE: loop exit
PB: predicated region body
PF: predicated region fallthrough
CT: control target
= control target key end

     0   :  { %7 = vsyncpa [#allocation3], 0  ;;  %s2185_s0 = inlined_call_operand.hbm [shape: f32[2,64,384], index: 0, kind: input, shape index: {}]   ;;  %s2186_s1 = inlined_call_operand.hbm [shape: bf16[384,384], index: 1, kind: input, shape index: {}]   ;;  %s2187_s2 = inlined_call_operand.hbm [shape: f32[2,64,128], index: 2, kind: output, shape index: {}]  }
   0x1   :  { %9 = vsyncpa [#allocation3 + $0x1], 0 }
   0x2   :  { %10 = vsyncpa [#allocation6], 0 }
   0x3   :  { %11 = vsyncpa [#allocation4], 0 }
   0x4   :  { %13 = vsyncpa [#allocation4 + $0x1], 0  ;;  %s1937_s9 = smov 0   ;;  %s1939_s10 = smov 0  }
   0x5   :  { %s1941_s11 = smov 0   ;;  %s1943_s12 = smov 0  }
   0x6 LB: > { %s1958_s13 = sadd.s32 4294967295, %s1910_s12   ;;  %s1357_s14 = sadd.s32 4294967294, %s1910_s12   ;;  %s1910_s12 = sphi %s1943_s12, %s2207_s12   ;;  %s1906_s11 = sphi %s1941_s11, %s2206_s11   ;;  %s1902_s10 = sphi %s1939_s10, %s2205_s10   ;;  %s1898_s9 = sphi %s1937_s9, %s2204_s9  }
   0x7   : > { %p39_p0 = scmp.ne.s32.totalorder %s1902_s10, %s1898_s9  ;;  %p2188_p1 = scmp.eq.s32.totalorder %s1958_s13, 0 }
   0x8   : > { %p90_p3 = scmp.eq.s32.totalorder %s1357_s14, 1  ;;  %p1358_p5 = scmp.ge.s32.totalorder %s1910_s12, 1 }
   0x9   : > { %p1967_p4 = por %p2188_p1, %p39_p0  ;;  %p97_p7 = scmp.lt.s32.totalorder %s1910_s12, 3 }
   0xa   : > { %p1972_p6 = por %p90_p3, %p39_p0  ;;  %s1912_s18 = smov [#allocation5]  }
   0xb   : > { %s2191_s15 = scalar_select %p1967_p4, 1, 0 }
   0xc   : > { %s2192_s16 = scalar_select %p1972_p6, 1, 0 }
   0xd   : > { %p1977_p8 = pnand %p1358_p5, %p97_p7  ;;  %s109_s19 = sshll.u32 %s1912_s18, 4  ;;  %s1981_s19 = int_to_ptr.vmem [resolvable:$true] %s109_s19 }
   0xe   : > { %s1993_s21 = sadd.s32 1, %s1910_s12   ;;  %s26_s22 = sadd.s32 1, %s1906_s11 }
   0xf   : > { %s2193_s17 = scalar_select %p1977_p8, 1, 0 }
  0x10   : > { %p1598_p9 = pneg %p1977_p8  ;;  %s23_s23 = ssub.s32 %s1910_s12, %s1993_s21 }
  0x11   : > { %s1782_s26 = scalar_lea.hbm %s2186_s1, 9216 }
  0x12   : > { %p1988_p11 = pnand %p1598_p9, %p2188_p1  ;;  %p1783_p12 = scmp.ne.s32.totalorder %s2186_s1, %s1782_s26 }
  0x13   : > { %p1789_p5 = scmp.lt.u32.totalorder %s1782_s26, %s2186_s1 }
  0x14   : > { %p1784_p13 = pneg %p1988_p11 }
  0x16   : > { %p1785_p0 = pnand %p1784_p13, %p1783_p12 }
  0x18   : > { %p1786_p3 = pneg %p1785_p0 }
  0x1a   : > { %p1791_p7 = pnand %p1789_p5, %p1786_p3 }
  0x1c   : > { %1794 = shalt.err (!%p1791_p7)
}
  0x1d   : > { %s1795_s3 = scalar_lea.vmem %s1981_s19, 9216  ;;  %p1803_p2 = scmp.lt.s32.totalorder %s1981_s19, %s1981_s19 }
  0x1e   : > { %p1796_p9 = scmp.ne.s32.totalorder %s1981_s19, %s1795_s3  ;;  %p1804_p6 = scmp.lt.s32.totalorder %s1795_s3, %s1795_s3 }
  0x20   : > { %p1798_p10 = pnand %p1796_p9, %p1784_p13  ;;  %p1805_p4 = por %p1804_p6, %p1803_p2 }
  0x22   : > { %p1799_p1 = pneg %p1798_p10 }
  0x24   : > { %p1806_p8 = pnand %p1805_p4, %p1799_p1 }
  0x26   : > { %1809 = shalt.err (!%p1806_p8)
}
  0x27   : > { %s1913_s4 = smov 192   ;;  %s1914_s5 = smov 12  }
  0x28   : > { %1601 = dma.hbm_to_vmem [thread:$0]  (!%p1988_p11), %s2186_s1, 9216, %s1981_s19, [#allocation6], %s1913_s4, %s1913_s4, %s1914_s5  }
  0x29   : > { %p24_p2 = scmp.eq.s32.totalorder %s23_s23, 0  ;;  %p33_p1 = scmp.ne.s32.totalorder %s1906_s11, %s1902_s10 }
  0x2a   : > { %p34_p4 = scmp.eq.s32.totalorder %s1910_s12, 0  ;;  %p1611_p6 = scmp.lt.s32.totalorder %s1910_s12, 2 }
  0x2b   : > { %s2024_s8 = scalar_select %p24_p2, %s1906_s11, %s26_s22  }
  0x2c   : > { %p35_p8 = por %p34_p4, %p33_p1  ;;  %p2195_p10 = scmp.eq.s32.totalorder %s1958_s13, 1 }
  0x2d   : > { %s123_s18 = sand.u32 1, %s1906_s11   ;;  %s1588_s24 = smul.u32 3072, %s1910_s12 }
  0x2e   : > { %p2028_p12 = por %p2195_p10, %p33_p1  ;;  %s1587_s25 = smul.u32 192, %s123_s18 }
  0x2f   : > { %s2037_s27 = scalar_lea.hbm %s2185_s0, %s1588_s24  ;;  %p2039_p11 = pnand %p1611_p6, %p35_p8 }
  0x30   : > { %s127_s22 = scalar_lea.vmem [#allocation2], %s1587_s25  ;;  %s2045_s28 = scalar_lea.sflag [#allocation3], %s123_s18 }
  0x31   : > { %s134_s23 = sshll.u32 %s127_s22, 4  ;;  %s1810_s29 = scalar_lea.hbm %s2037_s27, 3072  ;;  %s2043_s23 = int_to_ptr.vmem [resolvable:$true] %s134_s23 }
  0x32   : > { %p1811_p13 = scmp.ne.s32.totalorder %s2037_s27, %s1810_s29  ;;  %p1812_p0 = pneg %p2039_p11 }
  0x33   : > { %s1815_s4 = scalar_lea.hbm %s2185_s0, 6144  ;;  %p1816_p7 = scmp.lt.u32.totalorder %s2037_s27, %s2185_s0 }
  0x34   : > { %p1813_p3 = pnand %p1812_p0, %p1811_p13  ;;  %p1817_p9 = scmp.lt.u32.totalorder %s1815_s4, %s1810_s29 }
  0x35   : > { %p1819_p1 = scmp.lt.u32.totalorder %s1810_s29, %s2037_s27 }
  0x36   : > { %p1814_p5 = pneg %p1813_p3  ;;  %p1818_p2 = por %p1817_p9, %p1816_p7 }
  0x38   : > { %p1820_p4 = por %p1819_p1, %p1818_p2 }
  0x3a   : > { %p1821_p6 = pnand %p1820_p4, %p1814_p5 }
  0x3c   : > { %1824 = shalt.err (!%p1821_p6)
}
  0x3d   : > { %s1825_s7 = scalar_lea.vmem %s2043_s23, 3072  ;;  %s1915_s18 = smov [#allocation2]  }
  0x3e   : > { %p1826_p8 = scmp.ne.s32.totalorder %s2043_s23, %s1825_s7  ;;  %s1830_s24 = sshll.u32 %s1915_s18, 4  ;;  %s1831_s24 = int_to_ptr.vmem [resolvable:$false] %s1830_s24 }
  0x3f   : > { %s1832_s25 = scalar_lea.vmem %s1831_s24, 6144  ;;  %p1833_p3 = scmp.lt.s32.totalorder %s2043_s23, %s1831_s24 }
  0x40   : > { %p1828_p10 = pnand %p1826_p8, %p1812_p0  ;;  %p1834_p7 = scmp.lt.s32.totalorder %s1832_s25, %s1825_s7 }
  0x42   : > { %p1829_p13 = pneg %p1828_p10  ;;  %p1835_p9 = por %p1834_p7, %p1833_p3 }
  0x44   : > { %p1836_p2 = pnand %p1835_p9, %p1829_p13 }
  0x46   : > { %1839 = shalt.err (!%p1836_p2)
}
  0x47   : > { %s1916_s20 = smov 384   ;;  %s1917_s26 = smov 24  }
  0x48   : > { %1605 = dma.hbm_to_vmem [thread:$0]  (!%p2039_p11), %s2037_s27, 3072, %s2043_s23, %s2045_s28, %s1916_s20, %s1916_s20, %s1917_s26  }
  0x49   : > { %p2198_p0 = scmp.ne.s32.totalorder %s2193_s17, 0 }
  0x4a   : > { %s2076_s22 = sand.u32 (!%p2198_p0), 1, %s1902_s10   ;;  %p2199_p5 = scmp.ne.s32.totalorder (!%p2198_p0), %s2191_s15, 0 }
  0x4b   : > { %146 = sbr.rel (%p2198_p0) target bundleno = 1210 (0x4ba), region = 28  ;;  %s149_s30 = scalar_lea.sflag (!%p2198_p0), [#allocation3], %s2076_s22 }
  0x4c   : > { %s1589_s29 = smul.u32 (!%p2198_p0), 192, %s2076_s22 }
  0x4e   : > { %s2080_s3 = scalar_lea.vmem (!%p2198_p0), [#allocation2], %s1589_s29 }
  0x52   : > { %1885 = dma.done.wait (%p2199_p5), %s149_s30, 3072  }
  0x53   : > { %1887 = vsyncadd (%p2199_p5), %s149_s30, 4294964224  ;;  %p2200_p11 = scmp.eq.s32.totalorder %s1958_s13, 0 }
  0x55   : > { %1889 = dma.done.wait (%p2200_p11), [#allocation6], 9216   ;;  %p2201_p1 = pmov %p2200_p11 }
  0x56   : > { %v1654_v0 = vld [vmem:[#allocation5 + $0x4] ss:$12 sps:$4 sm:$0xff]   ;;  %v1656_v1 = vld [vmem:[#allocation5] ss:$12 sps:$4 sm:$0xff]   ;;  %v1657_v2 = vld [vmem:[#allocation5 + $0x1c] ss:$12 sps:$4 sm:$0xff]  }
  0x57   : > { %1891 = vsyncadd (%p2201_p1), [#allocation6], 4294958080  ;;  %694 = vmatprep.subr.bf16.mxu0 %v1654_v0  ;;  %v1659_v3 = vld [vmem:[#allocation5 + $0x18] ss:$12 sps:$4 sm:$0xff]   ;;  %v1660_v4 = vld [vmem:[#allocation5 + $0x34] ss:$12 sps:$4 sm:$0xff]  }
  0x58   : > { %695 = vmatpush1.bf16.msra.mxu0 %v1656_v1  ;;  %v1662_v5 = vld [vmem:[#allocation5 + $0x30] ss:$12 sps:$4 sm:$0xff]   ;;  %v1663_v6 = vld [vmem:[#allocation5 + $0x4c] ss:$12 sps:$4 sm:$0xff]   ;;  %v1665_v7 = vld [vmem:[#allocation5 + $0x48] ss:$12 sps:$4 sm:$0xff]  }
  0x59   : > { %696 = vmatprep.subr.bf16.mxu0 %v1657_v2  ;;  %v1666_v8 = vld [vmem:[#allocation5 + $0x64] ss:$12 sps:$4 sm:$0xff]   ;;  %v1668_v9 = vld [vmem:[#allocation5 + $0x60] ss:$12 sps:$4 sm:$0xff]   ;;  %v1669_v10 = vld [vmem:[#allocation5 + $0x7c] ss:$12 sps:$4 sm:$0xff]  }
  0x5a   : > { %v1671_v11 = vld [vmem:[#allocation5 + $0x78] ss:$12 sps:$4 sm:$0xff]   ;;  %v1672_v12 = vld [vmem:[#allocation5 + $0x94] ss:$12 sps:$4 sm:$0xff]   ;;  %v179_v13 = vld [vmem:[%s2080_s3 + $0x8] sm:$0xff]  ;;  %vm1082_vm1 = vcmask 523264  }
  0x5b   : > { %v182_v14 = vld [vmem:[%s2080_s3 + $0x20] sm:$0xff]  ;;  %v1674_v16 = vld [vmem:[#allocation5 + $0x90] ss:$12 sps:$4 sm:$0xff]   ;;  %v1675_v17 = vld [vmem:[#allocation5 + $0xac] ss:$12 sps:$4 sm:$0xff]   ;;  %s1364_s15 = sshll.u32 %s2076_s22, 6 }
  0x5c   : > { %697 = vmatpush1.bf16.msra.mxu0 %v1659_v3  ;;  %v203_v15 = vpack.c.bf16 %v182_v14, %v179_v13  ;;  %v1677_v18 = vld [vmem:[#allocation5 + $0xa8] ss:$12 sps:$4 sm:$0xff]   ;;  %v1678_v19 = vld [vmem:[#allocation5 + $0xc4] ss:$12 sps:$4 sm:$0xff]   ;;  %v1680_v20 = vld [vmem:[#allocation5 + $0xc0] ss:$12 sps:$4 sm:$0xff]  }
  0x5d   : > { %698 = vmatprep.subr.bf16.mxu0 %v1660_v4  ;;  %v1681_v21 = vld [vmem:[#allocation5 + $0xdc] ss:$12 sps:$4 sm:$0xff]   ;;  %v1683_v22 = vld [vmem:[#allocation5 + $0xd8] ss:$12 sps:$4 sm:$0xff]   ;;  %v1684_v23 = vld [vmem:[#allocation5 + $0xf4] ss:$12 sps:$4 sm:$0xff]  }
  0x5e   : > { %726 = vmatprep.mubr.bf16.mxu0 %v203_v15  ;;  %872 = vmatprep.mubr.bf16.mxu1 %v203_v15  ;;  %v1686_v24 = vld [vmem:[#allocation5 + $0xf0] ss:$12 sps:$4 sm:$0xff]   ;;  %v1687_v25 = vld [vmem:[#allocation5 + $0x10c] ss:$12 sps:$4 sm:$0xff]   ;;  %v1726_v26 = vld [vmem:[#allocation5 + $0xc8] ss:$12 sps:$4 sm:$0xff]  }
  0x5f   : > { %v1689_v27 = vld [vmem:[#allocation5 + $0x108] ss:$12 sps:$4 sm:$0xff]   ;;  %v1690_v29 = vld [vmem:[#allocation5 + $0x124] ss:$12 sps:$4 sm:$0xff]   ;;  %1447 = vmatprep.subr.bf16.mxu1 %v1726_v26  ;;  %v1728_v30 = vld [vmem:[#allocation5 + $0xe0] ss:$12 sps:$4 sm:$0xff]  }
  0x60   : > { %699 = vmatpush1.bf16.msra.mxu0 %v1662_v5  ;;  %v1727_v28 = vld [vmem:[#allocation5 + $0x8] ss:$12 sps:$4 sm:$0xff]   ;;  %v1729_v31 = vld [vmem:[#allocation5 + $0x20] ss:$12 sps:$4 sm:$0xff]   ;;  %v1730_v32 = vld [vmem:[#allocation5 + $0xf8] ss:$12 sps:$4 sm:$0xff]  }
  0x61   : > { %700 = vmatprep.subr.bf16.mxu0 %v1663_v6  ;;  %1448 = vmatpush3.bf16.msra.mxu1 %v1727_v28  ;;  %v1692_v33 = vld [vmem:[#allocation5 + $0x120] ss:$12 sps:$4 sm:$0xff]   ;;  %v1693_v34 = vld [vmem:[#allocation5 + $0x13c] ss:$12 sps:$4 sm:$0xff]   ;;  %v1731_v35 = vld [vmem:[#allocation5 + $0x38] ss:$12 sps:$4 sm:$0xff]  }
  0x62   : > { %1449 = vmatprep.subr.bf16.mxu1 %v1728_v30  ;;  %v1732_v36 = vld [vmem:[#allocation5 + $0x110] ss:$12 sps:$4 sm:$0xff]   ;;  %v1695_v37 = vld [vmem:[#allocation5 + $0x138] ss:$12 sps:$4 sm:$0xff]   ;;  %v1696_v38 = vld [vmem:[#allocation5 + $0x154] ss:$12 sps:$4 sm:$0xff]  }
  0x63   : > { %v1733_v39 = vld [vmem:[#allocation5 + $0x50] ss:$12 sps:$4 sm:$0xff]   ;;  %v1734_v40 = vld [vmem:[#allocation5 + $0x128] ss:$12 sps:$4 sm:$0xff]   ;;  %v1699_v42 = vld [vmem:[#allocation5 + $0x16c] ss:$12 sps:$4 sm:$0xff]  }
  0x64   : > { %701 = vmatpush1.bf16.msra.mxu0 %v1665_v7  ;;  %v1698_v41 = vld [vmem:[#allocation5 + $0x150] ss:$12 sps:$4 sm:$0xff]   ;;  %v1735_v43 = vld [vmem:[#allocation5 + $0x68] ss:$12 sps:$4 sm:$0xff]   ;;  %v1736_v44 = vld [vmem:[#allocation5 + $0x140] ss:$12 sps:$4 sm:$0xff]  }
  0x65   : > { %702 = vmatprep.subr.bf16.mxu0 %v1666_v8  ;;  %1450 = vmatpush3.bf16.msra.mxu1 %v1729_v31  ;;  %v1701_v45 = vld [vmem:[#allocation5 + $0x168] ss:$12 sps:$4 sm:$0xff]   ;;  %v178_v46 = vld [vmem:[%s2080_s3] sm:$0xff]  ;;  %v181_v47 = vld [vmem:[%s2080_s3 + $0x18] sm:$0xff]  ;;  %v1918_v30 = vmov 0   ;;  %s176_s17 = scalar_lea.vmem [#allocation7], %s1364_s15 }
  0x66   : > { %1451 = vmatprep.subr.bf16.mxu1 %v1730_v32  ;;  %v1704_v48 = vld [vmem:[#allocation5 + $0x184] ss:$12 sps:$4 sm:$0xff]   ;;  %v185_v49 = vld [vmem:[%s2080_s3 + $0x38] sm:$0xff]  ;;  %v1737_v51 = vld [vmem:[#allocation5 + $0x80] ss:$12 sps:$4 sm:$0xff]   ;;  %v202_v53 = vpack.c.bf16 %v181_v47, %v178_v46  ;;  %s1274_s27 = sshll.u32 %s176_s17, 4  ;;  %s2136_s27 = int_to_ptr.vmem [resolvable:$true] %s1274_s27 }
  0x67   : > { %v188_v50 = vld [vmem:[%s2080_s3 + $0x50] sm:$0xff]  ;;  %v1738_v52 = vld [vmem:[#allocation5 + $0x158] ss:$12 sps:$4 sm:$0xff]   ;;  %v1702_v54 = vld [vmem:[#allocation5 + $0x180] ss:$12 sps:$4 sm:$0xff]   ;;  %s1446_s19 = sshll.u32 %s1958_s13, 10 }
  0x68   : > { %703 = vmatpush1.bf16.msra.mxu0 %v1668_v9  ;;  %v206_v55 = vpack.c.bf16 %v188_v50, %v185_v49  ;;  %v1707_v56 = vld [vmem:[#allocation5 + $0x19c] ss:$12 sps:$4 sm:$0xff]   ;;  %v1739_v57 = vld [vmem:[#allocation5 + $0x98] ss:$12 sps:$4 sm:$0xff]   ;;  %v184_v60 = vld [vmem:[%s2080_s3 + $0x30] sm:$0xff]  ;;  %s2141_s4 = scalar_lea.hbm %s2187_s2, %s1446_s19  ;;  %s1261_s5 = scalar_lea.sflag [#allocation4], %s2076_s22 }
  0x69   : > { %704 = vmatprep.subr.bf16.mxu0 %v1669_v10  ;;  %1452 = vmatpush3.bf16.msra.mxu1 %v1731_v35  ;;  %v1740_v58 = vld [vmem:[#allocation5 + $0x170] ss:$12 sps:$4 sm:$0xff]   ;;  %v1705_v59 = vld [vmem:[#allocation5 + $0x198] ss:$12 sps:$4 sm:$0xff]   ;;  %v187_v61 = vld [vmem:[%s2080_s3 + $0x48] sm:$0xff]  ;;  %s1840_s13 = scalar_lea.vmem %s2136_s27, 1024 }
  0x6a   : > { %1453 = vmatprep.subr.bf16.mxu1 %v1732_v36  ;;  %v1710_v62 = vld [vmem:[#allocation5 + $0x1b4] ss:$12 sps:$4 sm:$0xff]   ;;  %v191_v63 = vld [vmem:[%s2080_s3 + $0x68] sm:$0xff]  ;;  %v1741_v1 = vld [vmem:[#allocation5 + $0xb0] ss:$12 sps:$4 sm:$0xff]   ;;  %v205_v3 = vpack.c.bf16 %v187_v61, %v184_v60  ;;  %p1841_p4 = scmp.ne.s32.totalorder %s2136_s27, %s1840_s13  ;;  %s1919_s6 = smov [#allocation7]  }
  0x6b   : > { %v194_v0 = vld [vmem:[%s2080_s3 + $0x80] sm:$0xff]  ;;  %v1742_v2 = vld [vmem:[#allocation5 + $0x188] ss:$12 sps:$4 sm:$0xff]   ;;  %v1708_v4 = vld [vmem:[#allocation5 + $0x1b0] ss:$12 sps:$4 sm:$0xff]   ;;  %s1844_s7 = sshll.u32 %s1919_s6, 4  ;;  %s1845_s7 = int_to_ptr.vmem [resolvable:$false] %s1844_s7 }
  0x6c   : > { %705 = vmatpush1.bf16.msra.mxu0 %v1671_v11  ;;  %v209_v5 = vpack.c.bf16 %v194_v0, %v191_v63  ;;  %v1713_v6 = vld [vmem:[#allocation5 + $0x1cc] ss:$12 sps:$4 sm:$0xff]   ;;  %v1711_v8 = vld [vmem:[#allocation5 + $0x1c8] ss:$12 sps:$4 sm:$0xff]   ;;  %v190_v9 = vld [vmem:[%s2080_s3 + $0x60] sm:$0xff]  ;;  %p1842_p6 = pnand %p1841_p4, %p2028_p12  ;;  %s1846_s18 = scalar_lea.vmem %s1845_s7, 2048 }
  0x6d   : > { %706 = vmatprep.subr.bf16.mxu0 %v1672_v12  ;;  %1454 = vmatpush3.bf16.msra.mxu1 %v1733_v39  ;;  %v1743_v7 = vld [vmem:[#allocation5 + $0x1a0] ss:$12 sps:$4 sm:$0xff]   ;;  %v193_v10 = vld [vmem:[%s2080_s3 + $0x78] sm:$0xff]  ;;  %v1716_v11 = vld [vmem:[#allocation5 + $0x1e4] ss:$12 sps:$4 sm:$0xff]   ;;  %p1847_p10 = scmp.lt.s32.totalorder %s2136_s27, %s1845_s7  ;;  %p1848_p13 = scmp.lt.s32.totalorder %s1846_s18, %s1840_s13 }
  0x6e   : > { %1455 = vmatprep.subr.bf16.mxu1 %v1734_v40  ;;  %v197_v12 = vld [vmem:[%s2080_s3 + $0x98] sm:$0xff]  ;;  %v200_v13 = vld [vmem:[%s2080_s3 + $0xb0] sm:$0xff]  ;;  %v208_v14 = vpack.c.bf16 %v193_v10, %v190_v9  ;;  %v1747_v28 = vld [vmem:[#allocation5 + $0x200] ss:$12 sps:$4 sm:$0xff]   ;;  %p1843_p8 = pneg %p1842_p6 }
  0x6f   : > { %v1744_v15 = vld [vmem:[#allocation5 + $0x1b8] ss:$12 sps:$4 sm:$0xff]   ;;  %v1720_v26 = vld [vmem:[#allocation5 + $0x210] ss:$12 sps:$4 sm:$0xff]   ;;  %v183_v32 = vld [vmem:[%s2080_s3 + $0x28] sm:$0xff]  ;;  %p1849_p3 = por %p1848_p13, %p1847_p10 }
  0x70   : > { %707 = vmatpush1.bf16.msra.mxu0 %v1674_v16  ;;  %v1714_v16 = vld [vmem:[#allocation5 + $0x1e0] ss:$12 sps:$4 sm:$0xff]   ;;  %v180_v31 = vld [vmem:[%s2080_s3 + $0x10] sm:$0xff] }
  0x71   : > { %708 = vmatprep.subr.bf16.mxu0 %v1675_v17  ;;  %1456 = vmatpush3.bf16.msra.mxu1 %v1735_v43  ;;  %v212_v17 = vpack.c.bf16 %v200_v13, %v197_v12  ;;  %v1749_v35 = vld [vmem:[#allocation5 + $0x230] ss:$12 sps:$4 sm:$0xff]   ;;  %v186_v36 = vld [vmem:[%s2080_s3 + $0x40] sm:$0xff]  ;;  %v195_v40 = vld [vmem:[%s2080_s3 + $0x88] sm:$0xff]  ;;  %p1850_p7 = pnand %p1849_p3, %p1843_p8 }
  0x72   : > { %1457 = vmatprep.subr.bf16.mxu1 %v1736_v44  ;;  %v192_v39 = vld [vmem:[%s2080_s3 + $0x70] sm:$0xff]  ;;  %v201_v43 = vld [vmem:[%s2080_s3 + $0xb8] sm:$0xff] }
  0x74   : > { %709 = vmatpush1.bf16.msra.mxu0 %v1677_v18  ;;  %v1719_v18 = vld [vmem:[#allocation5 + $0x1fc] ss:$12 sps:$4 sm:$0xff]  }
  0x75   : > { %710 = vmatprep.subr.bf16.mxu0 %v1678_v19  ;;  %1458 = vmatpush3.bf16.msra.mxu1 %v1737_v51  ;;  %v1745_v19 = vld [vmem:[#allocation5 + $0x1d0] ss:$12 sps:$4 sm:$0xff]  }
  0x76   : > { %1459 = vmatprep.subr.bf16.mxu1 %v1738_v52 }
  0x78   : > { %711 = vmatpush1.bf16.msra.mxu0 %v1680_v20  ;;  %v1717_v20 = vld [vmem:[#allocation5 + $0x1f8] ss:$12 sps:$4 sm:$0xff]  }
  0x79   : > { %712 = vmatprep.subr.bf16.mxu0 %v1681_v21  ;;  %1460 = vmatpush3.bf16.msra.mxu1 %v1739_v57  ;;  %v196_v21 = vld [vmem:[%s2080_s3 + $0x90] sm:$0xff] }
  0x7a   : > { %1461 = vmatprep.subr.bf16.mxu1 %v1740_v58 }
  0x7c   : > { %713 = vmatpush1.bf16.msra.mxu0 %v1683_v22  ;;  %v199_v22 = vld [vmem:[%s2080_s3 + $0xa8] sm:$0xff] }
  0x7d   : > { %714 = vmatprep.subr.bf16.mxu0 %v1684_v23  ;;  %1462 = vmatpush3.bf16.msra.mxu1 %v1741_v1  ;;  %v1722_v23 = vld [vmem:[#allocation5 + $0x214] ss:$12 sps:$4 sm:$0xff]  }
  0x7e   : > { %1515 = vmatprep.subr.bf16.mxu1 %v1742_v2 }
  0x80   : > { %715 = vmatpush1.bf16.msra.mxu0 %v1686_v24  ;;  %873 = vmatmul.mubr.bf16.vlgmr.msra.gmra.mrb[0].mxu1 %v202_v53  ;;  %v211_v24 = vpack.c.bf16 %v199_v22, %v196_v21 }
  0x81   : > { %716 = vmatprep.subr.bf16.mxu0 %v1687_v25  ;;  %1516 = vmatpush3.bf16.msra.mxu1 %v1742_v2  ;;  %v1746_v25 = vld [vmem:[#allocation5 + $0x1e8] ss:$12 sps:$4 sm:$0xff]  }
  0x82   : > { %880 = vmatprep.mubr.bf16.mxu1 %v206_v55  ;;  %1517 = vmatprep.subr.bf16.mxu1 %v1743_v7 }
  0x84   : > { %717 = vmatpush1.bf16.msra.mxu0 %v1689_v27  ;;  %v1725_v27 = vld [vmem:[#allocation5 + $0x22c] ss:$12 sps:$4 sm:$0xff]  }
  0x85   : > { %718 = vmatprep.subr.bf16.mxu0 %v1690_v29  ;;  %1518 = vmatpush3.bf16.msra.mxu1 %v1743_v7  ;;  %v1723_v29 = vld [vmem:[#allocation5 + $0x228] ss:$12 sps:$4 sm:$0xff]  }
  0x86   : > { %1519 = vmatprep.subr.bf16.mxu1 %v1744_v15 }
  0x88   : > { %719 = vmatpush1.bf16.msra.mxu0 %v1692_v33  ;;  %881 = vmatmul.mubr.bf16.gmra.mrb[4].mxu1 %v205_v3  ;;  %v204_v33 = vpack.c.bf16 %v183_v32, %v180_v31 }
  0x89   : > { %720 = vmatprep.subr.bf16.mxu0 %v1693_v34  ;;  %1520 = vmatpush3.bf16.msra.mxu1 %v1744_v15  ;;  %v1748_v34 = vld [vmem:[#allocation5 + $0x218] ss:$12 sps:$4 sm:$0xff]  }
  0x8a   : > { %888 = vmatprep.mubr.bf16.mxu1 %v209_v5  ;;  %1521 = vmatprep.subr.bf16.mxu1 %v1745_v19 }
  0x8c   : > { %721 = vmatpush1.bf16.msra.mxu0 %v1695_v37  ;;  %v189_v37 = vld [vmem:[%s2080_s3 + $0x58] sm:$0xff] }
  0x8d   : > { %722 = vmatprep.subr.bf16.mxu0 %v1696_v38  ;;  %1522 = vmatpush3.bf16.msra.mxu1 %v1745_v19  ;;  %v207_v38 = vpack.c.bf16 %v189_v37, %v186_v36 }
  0x8e   : > { %1523 = vmatprep.subr.bf16.mxu1 %v1746_v25 }
  0x90   : > { %723 = vmatpush1.bf16.msra.mxu0 %v1698_v41  ;;  %889 = vmatmul.mubr.bf16.gmra.mrb[8].mxu1 %v208_v14  ;;  %v210_v41 = vpack.c.bf16 %v195_v40, %v192_v39 }
  0x91   : > { %724 = vmatprep.subr.bf16.mxu0 %v1699_v42  ;;  %1524 = vmatpush3.bf16.msra.mxu1 %v1746_v25  ;;  %v198_v42 = vld [vmem:[%s2080_s3 + $0xa0] sm:$0xff] }
  0x92   : > { %896 = vmatprep.mubr.bf16.mxu1 %v212_v17  ;;  %1525 = vmatprep.subr.bf16.mxu1 %v1747_v28  ;;  %v213_v44 = vpack.c.bf16 %v201_v43, %v198_v42 }
  0x94   : > { %725 = vmatpush1.bf16.msra.mxu0 %v1701_v45 }
  0x95   : > { %767 = vmatprep.subr.bf16.mxu0 %v1704_v48  ;;  %1526 = vmatpush3.bf16.msra.mxu1 %v1747_v28 }
  0x96   : > { %1527 = vmatprep.subr.bf16.mxu1 %v1748_v34 }
  0x97   : > { %727 = vmatmul.mubr.bf16.vlgmr.msra.gmra.mrb[0].mxu0 %v202_v53 }
  0x98   : > { %768 = vmatpush1.bf16.msra.mxu0 %v1702_v54  ;;  %736 = vmatprep.mubr.bf16.mxu0 %v206_v55 }
  0x99   : > { %769 = vmatprep.subr.bf16.mxu0 %v1707_v56  ;;  %897 = vmatmul.mubr.bf16.gmra.mrb[12].mxu1 %v211_v24 }
  0x9a   : > { %1528 = vmatpush3.bf16.msra.mxu1 %v1748_v34  ;;  %1531 = vmatprep.mubr.bf16.mxu1 %v204_v33 }
  0x9b   : > { %1529 = vmatprep.subr.bf16.mxu1 %v1749_v35 }
  0x9c   : > { %770 = vmatpush1.bf16.msra.mxu0 %v1705_v59 }
  0x9d   : > { %771 = vmatprep.subr.bf16.mxu0 %v1710_v62 }
  0x9e   : > { %1530 = vmatpush3.bf16.msra.mxu1 %v1749_v35 }
  0x9f   : > { %737 = vmatmul.mubr.bf16.gmra.mrb[4].mxu0 %v205_v3 }
  0xa0   : > { %772 = vmatpush1.bf16.msra.mxu0 %v1708_v4  ;;  %746 = vmatprep.mubr.bf16.mxu0 %v209_v5 }
  0xa1   : > { %773 = vmatprep.subr.bf16.mxu0 %v1713_v6  ;;  %1532 = vmatmul.mubr.bf16.vlgmr.msra.gmra.mrb[16].mxu1 %v207_v38 }
  0xa2   : > { %1535 = vmatprep.mubr.bf16.mxu1 %v210_v41 }
  0xa4   : > { %774 = vmatpush1.bf16.msra.mxu0 %v1711_v8 }
  0xa5   : > { %775 = vmatprep.subr.bf16.mxu0 %v1716_v11 }
  0xa7   : > { %747 = vmatmul.mubr.bf16.gmra.mrb[8].mxu0 %v208_v14 }
  0xa8   : > { %776 = vmatpush1.bf16.msra.mxu0 %v1714_v16  ;;  %756 = vmatprep.mubr.bf16.mxu0 %v212_v17 }
  0xa9   : > { %777 = vmatprep.subr.bf16.mxu0 %v1719_v18  ;;  %1536 = vmatmul.mubr.bf16.gmra.mrb[20].mxu1 %v213_v44 }
  0xac   : > { %778 = vmatpush1.bf16.msra.mxu0 %v1717_v20 }
  0xad   : > { %779 = vmatprep.subr.bf16.mxu0 %v1722_v23 }
  0xaf   : > { %757 = vmatmul.mubr.bf16.gmra.mrb[12].mxu0 %v211_v24 }
  0xb0   : > { %780 = vmatpush1.bf16.msra.mxu0 %v1720_v26  ;;  %799 = vmatprep.mubr.bf16.mxu0 %v1918_v30 }
  0xb1   : > { %781 = vmatprep.subr.bf16.mxu0 %v1725_v27 }
  0xb4   : > { %782 = vmatpush1.bf16.msra.mxu0 %v1723_v29 }
  0xb7   : > { %800 = vmatmul.mubr.bf16.vlgmr.msra.gmra.mrb[0].mxu0 %v204_v33 }
  0xb8   : > { %809 = vmatprep.mubr.bf16.mxu0 %v1918_v30 }
  0xbf   : > { %810 = vmatmul.mubr.bf16.gmra.mrb[4].mxu0 %v207_v38 }
  0xc0   : > { %819 = vmatprep.mubr.bf16.mxu0 %v1918_v30 }
  0xc7   : > { %820 = vmatmul.mubr.bf16.gmra.mrb[8].mxu0 %v210_v41 }
  0xc8   : > { %829 = vmatprep.mubr.bf16.mxu0 %v1918_v30 }
  0xcf   : > { %830 = vmatmul.mubr.bf16.gmra.mrb[12].mxu0 %v213_v44 }
 0x153   : > { %v1463_v45 = vpop.f32.mrb[0].mxu1 }
 0x154   : > { %v1464_v46 = vpop.f32.mrb[1].mxu1 }
 0x155   : > { %v1465_v47 = vadd.f32 %v1464_v46, %v1463_v45  ;;  %v1466_v48 = vpop.f32.mrb[2].mxu1 }
 0x156   : > { %v1467_v49 = vpop.f32.mrb[3].mxu1 }
 0x157   : > { %v1468_v50 = vadd.f32 %v1467_v49, %v1466_v48  ;;  %v1055_v49 = vlaneseq }
 0x15b   : > { %v1469_v51 = vpop.f32.mrb[4].mxu1 }
 0x15c   : > { %v1470_v52 = vpop.f32.mrb[5].mxu1 }
 0x15d   : > { %v1471_v53 = vadd.f32 %v1470_v52, %v1469_v51  ;;  %v1472_v54 = vpop.f32.mrb[6].mxu1  ;;  %v1065_v52 = vand.u32 127, %v1055_v49 }
 0x15e   : > { %v1473_v55 = vpop.f32.mrb[7].mxu1 }
 0x15f   : > { %v1474_v56 = vadd.f32 %v1473_v55, %v1472_v54 }
 0x163   : > { %v1475_v57 = vpop.f32.mrb[8].mxu1 }
 0x164   : > { %v1476_v58 = vpop.f32.mrb[9].mxu1 }
 0x165   : > { %v1477_v59 = vadd.f32 %v1476_v58, %v1475_v57  ;;  %v1478_v60 = vpop.f32.mrb[10].mxu1 }
 0x166   : > { %v1479_v61 = vpop.f32.mrb[11].mxu1 }
 0x167   : > { %v1480_v62 = vadd.f32 %v1479_v61, %v1478_v60 }
 0x16c   : > { %v1481_v2 = vpop.f32.mrb[12].mxu1 }
 0x16d   : > { %v1482_v5 = vpop.f32.mrb[13].mxu1 }
 0x16e   : > { %v1483_v7 = vadd.f32 %v1482_v5, %v1481_v2  ;;  %v1484_v8 = vpop.f32.mrb[14].mxu1 }
 0x16f   : > { %v1485_v9 = vpop.f32.mrb[15].mxu1 }
 0x170   : > { %v1486_v10 = vadd.f32 %v1485_v9, %v1484_v8 }
 0x174   : > { %v1533_v14 = vpop.f32.mrb[16].mxu1 }
 0x175   : > { %v948_v17 = vadd.f32 %v1533_v14, %v1471_v53  ;;  %v939_v18 = vpop.f32.mrb[17].mxu1 }
 0x176   : > { %v940_v20 = vadd.f32 %v1465_v47, %v939_v18  ;;  %v1534_v21 = vpop.f32.mrb[18].mxu1 }
 0x177   : > { %v951_v22 = vadd.f32 %v1534_v21, %v1474_v56  ;;  %v942_v23 = vpop.f32.mrb[19].mxu1 }
 0x178   : > { %v943_v24 = vadd.f32 %v1468_v50, %v942_v23  ;;  %v1056_v50 = vshrl.u32 %v1055_v49, 7 }
 0x179   : > { %v979_v25 = vpack.c.bf16 %v951_v22, %v948_v17 }
 0x17a   : > { %v978_v27 = vpack.c.bf16 %v943_v24, %v940_v20  ;;  %v1058_v51 = vadd.s32 16, %v1056_v50  ;;  %v1059_v53 = vadd.s32 24, %v1056_v50  ;;  %v1057_v54 = vadd.s32 8, %v1056_v50 }
 0x17b   : > { %vm1066_vm2 = vcmp.le.s32.totalorder %v1065_v52, %v1056_v50 }
 0x17c   : > { %v1537_v30 = vpop.f32.mrb[20].mxu1  ;;  %vm1068_vm0 = vcmp.le.s32.totalorder %v1065_v52, %v1058_v51  ;;  %vm1069_vm3 = vcmp.le.s32.totalorder %v1065_v52, %v1059_v53  ;;  %vm1067_vm4 = vcmp.le.s32.totalorder %v1065_v52, %v1057_v54 }
 0x17d   : > { %v964_v33 = vadd.f32 %v1537_v30, %v1483_v7  ;;  %v955_v34 = vpop.f32.mrb[21].mxu1  ;;  %v1062_v7 = vadd.s32 48, %v1056_v50 }
 0x17e   : > { %v956_v36 = vadd.f32 %v1477_v59, %v955_v34  ;;  %v1538_v37 = vpop.f32.mrb[22].mxu1 }
 0x17f   : > { %v967_v38 = vadd.f32 %v1538_v37, %v1486_v10  ;;  %v958_v39 = vpop.f32.mrb[23].mxu1  ;;  %vm1072_vm7 = vcmp.le.s32.totalorder %v1065_v52, %v1062_v7 }
 0x180   : > { %v959_v40 = vadd.f32 %v1480_v62, %v958_v39 }
 0x181   : > { %v981_v41 = vpack.c.bf16 %v967_v38, %v964_v33 }
 0x182   : > { %v980_v43 = vpack.c.bf16 %v959_v40, %v956_v36 }
 0x18a   : > { %v801_v63 = vpop.f32.mrb[0].mxu0 }
 0x18b   : > { %v803_v0 = vpop.f32.mrb[1].mxu0 }
 0x18c   : > { %v805_v1 = vpop.f32.mrb[2].mxu0 }
 0x18d   : > { %v970_v3 = vpack.c.bf16 %v805_v1, %v801_v63  ;;  %v807_v4 = vpop.f32.mrb[3].mxu0 }
 0x18e   : > { %v974_v6 = vpack.c.bf16 %v807_v4, %v803_v0  ;;  %v1060_v4 = vadd.s32 32, %v1056_v50 }
 0x18f   : > { %1547 = vmatprep.mubr.bf16.mxu1 %v970_v3 }
 0x190   : > { %1539 = vmatprep.subr.bf16.mxu1 %v974_v6  ;;  %vm1070_vm5 = vcmp.le.s32.totalorder %v1065_v52, %v1060_v4 }
 0x191   : > { %1540 = vmatpush3.bf16.xpose.msra.mxu1 %v974_v6  ;;  %v1061_v6 = vadd.s32 40, %v1056_v50 }
 0x192   : > { %v811_v11 = vpop.f32.mrb[4].mxu0 }
 0x193   : > { %v813_v12 = vpop.f32.mrb[5].mxu0  ;;  %vm1071_vm6 = vcmp.le.s32.totalorder %v1065_v52, %v1061_v6 }
 0x194   : > { %v815_v13 = vpop.f32.mrb[6].mxu0 }
 0x195   : > { %v971_v15 = vpack.c.bf16 %v815_v13, %v811_v11  ;;  %v817_v16 = vpop.f32.mrb[7].mxu0 }
 0x196   : > { %v975_v19 = vpack.c.bf16 %v817_v16, %v813_v12  ;;  %v1063_v12 = vadd.s32 56, %v1056_v50 }
 0x198   : > { %1541 = vmatprep.subr.bf16.mxu1 %v975_v19  ;;  %vm1073_vm8 = vcmp.le.s32.totalorder %v1065_v52, %v1063_v12 }
 0x199   : > { %1542 = vmatpush3.bf16.xpose.msra.mxu1 %v975_v19 }
 0x19a   : > { %v821_v26 = vpop.f32.mrb[8].mxu0 }
 0x19b   : > { %v823_v28 = vpop.f32.mrb[9].mxu0 }
 0x19c   : > { %v825_v29 = vpop.f32.mrb[10].mxu0 }
 0x19d   : > { %v972_v31 = vpack.c.bf16 %v825_v29, %v821_v26  ;;  %v827_v32 = vpop.f32.mrb[11].mxu0 }
 0x19e   : > { %v976_v35 = vpack.c.bf16 %v827_v32, %v823_v28 }
 0x1a0   : > { %1543 = vmatprep.subr.bf16.mxu1 %v976_v35 }
 0x1a1   : > { %1544 = vmatpush3.bf16.xpose.msra.mxu1 %v976_v35 }
 0x1a2   : > { %v831_v42 = vpop.f32.mrb[12].mxu0 }
 0x1a3   : > { %v833_v44 = vpop.f32.mrb[13].mxu0 }
 0x1a4   : > { %v835_v45 = vpop.f32.mrb[14].mxu0 }
 0x1a5   : > { %v973_v46 = vpack.c.bf16 %v835_v45, %v831_v42  ;;  %v837_v47 = vpop.f32.mrb[15].mxu0 }
 0x1a6   : > { %v977_v48 = vpack.c.bf16 %v837_v47, %v833_v44 }
 0x1a8   : > { %1545 = vmatprep.subr.bf16.mxu1 %v977_v48 }
 0x1a9   : > { %1546 = vmatpush3.bf16.xpose.msra.mxu1 %v977_v48 }
 0x1aa   : > { %1555 = vmatprep.subr.bf16.mxu1 %v978_v27 }
 0x1b0   : > { %1548 = vmatmul.mubr.bf16.vlgmr.msra.gmra.mrb[24].mxu1 %v971_v15 }
 0x1b1   : > { %1551 = vmatprep.mubr.bf16.mxu1 %v972_v31  ;;  %1556 = vmatpush3.bf16.msra.mxu1 %v978_v27 }
 0x1b2   : > { %1557 = vmatprep.subr.bf16.mxu1 %v979_v25 }
 0x1b5   : > { %1558 = vmatpush3.bf16.msra.mxu1 %v979_v25 }
 0x1b6   : > { %1559 = vmatprep.subr.bf16.mxu1 %v980_v43 }
 0x1b8   : > { %1552 = vmatmul.mubr.bf16.gmra.mrb[28].mxu1 %v973_v46 }
 0x1b9   : > { %1560 = vmatpush3.bf16.msra.mxu1 %v980_v43 }
 0x1ba   : > { %1561 = vmatprep.subr.bf16.mxu1 %v981_v41 }
 0x1bd   : > { %1562 = vmatpush3.bf16.msra.mxu1 %v981_v41 }
 0x283   : > { %v1549_v55 = vpop.f32.mrb[24].mxu1 }
 0x284   : > { %v1049_v56 = vmul.f32 0.05103104, %v1549_v55  ;;  %v1016_v57 = vpop.f32.mrb[25].mxu1 }
 0x285   : > { %v1047_v58 = vmul.f32 0.05103104, %v1016_v57  ;;  %v1550_v59 = vpop.f32.mrb[26].mxu1 }
 0x286   : > { %v1050_v60 = vmul.f32 0.05103104, %v1550_v59  ;;  %v1019_v61 = vpop.f32.mrb[27].mxu1  ;;  %v1076_v62 = vsel %vm1068_vm0, %v1049_v56, -1e+30 }
 0x287   : > { %v1048_v63 = vmul.f32 0.05103104, %v1019_v61  ;;  %v1089_v0 = vsel %vm1082_vm1, %v1076_v62, -inf  ;;  %v1074_v1 = vsel %vm1066_vm2, %v1047_v58, -1e+30 }
 0x288   : > { %1090 = vmax.xlane.f32.xlu1 %v1089_v0  ;;  %v1083_v2 = vsel %vm1082_vm1, %v1074_v1, -inf  ;;  %v1077_v3 = vsel %vm1069_vm3, %v1050_v60, -1e+30 }
 0x289   : > { %1084 = vmax.xlane.f32.xlu0 %v1083_v2  ;;  %v1075_v5 = vsel %vm1067_vm4, %v1048_v63, -1e+30  ;;  %v1092_v9 = vsel %vm1082_vm1, %v1077_v3, -inf }
 0x28a   : > { %v1086_v11 = vsel %vm1082_vm1, %v1075_v5, -inf }
 0x28b   : > { %v1553_v8 = vpop.f32.mrb[28].mxu1 }
 0x28c   : > { %1093 = vmax.xlane.f32.xlu1 %v1092_v9  ;;  %v1032_v10 = vpop.f32.mrb[29].mxu1  ;;  %v1053_v13 = vmul.f32 0.05103104, %v1553_v8 }
 0x28d   : > { %v1051_v14 = vmul.f32 0.05103104, %v1032_v10  ;;  %1087 = vmax.xlane.f32.xlu0 %v1086_v11  ;;  %v1554_v15 = vpop.f32.mrb[30].mxu1 }
 0x28e   : > { %v1035_v16 = vpop.f32.mrb[31].mxu1  ;;  %v1054_v17 = vmul.f32 0.05103104, %v1554_v15  ;;  %v1080_v22 = vsel %vm1072_vm7, %v1053_v13, -1e+30 }
 0x28f   : > { %v1052_v18 = vmul.f32 0.05103104, %v1035_v16  ;;  %v1078_v19 = vsel %vm1070_vm5, %v1051_v14, -1e+30  ;;  %v1101_v25 = vsel %vm1082_vm1, %v1080_v22, -inf }
 0x290   : > { %v1095_v20 = vsel %vm1082_vm1, %v1078_v19, -inf  ;;  %v1081_v24 = vsel %vm1073_vm8, %v1054_v17, -1e+30 }
 0x291   : > { %1096 = vmax.xlane.f32.xlu0 %v1095_v20  ;;  %v1079_v21 = vsel %vm1071_vm6, %v1052_v18, -1e+30  ;;  %v1104_v26 = vsel %vm1082_vm1, %v1081_v24, -inf }
 0x292   : > { %v1098_v23 = vsel %vm1082_vm1, %v1079_v21, -inf }
 0x293   : > { %1099 = vmax.xlane.f32.xlu1 %v1098_v23 }
 0x295   : > { %1102 = vmax.xlane.f32.xlu0 %v1101_v25 }
 0x297   : > { %1105 = vmax.xlane.f32.xlu1 %v1104_v26 }
 0x315   : > { %v1091_v27 = vpop.xlane.xlu1 %1090 }
 0x316   : > { %v1109_v28 = vsub.f32 %v1076_v62, %v1091_v27  ;;  %v1085_v29 = vpop.xlane.xlu0 %1084 }
 0x317   : > { %v1107_v30 = vsub.f32 %v1074_v1, %v1085_v29 }
 0x318   : > { %v1119_v31 = vmul.f32 1.442695, %v1109_v28 }
 0x319   : > { %v1115_v32 = vmul.f32 1.442695, %v1107_v30  ;;  %v1094_v33 = vpop.xlane.xlu1 %1093 }
 0x31a   : > { %v1110_v34 = vsub.f32 %v1077_v3, %v1094_v33  ;;  %v1088_v35 = vpop.xlane.xlu0 %1087 }
 0x31b   : > { %1750 = vpow2.f32 %v1115_v32  ;;  %v1108_v36 = vsub.f32 %v1075_v5, %v1088_v35 }
 0x31c   : > { %1752 = vpow2.f32 %v1119_v31  ;;  %v1121_v37 = vmul.f32 1.442695, %v1110_v34 }
 0x31d   : > { %v1117_v38 = vmul.f32 1.442695, %v1108_v36 }
 0x31e   : > { %v1097_v39 = vpop.xlane.xlu0 %1096 }
 0x31f   : > { %1754 = vpow2.f32 %v1117_v38  ;;  %v1111_v40 = vsub.f32 %v1078_v19, %v1097_v39 }
 0x320   : > { %v1100_v41 = vpop.xlane.xlu1 %1099  ;;  %1756 = vpow2.f32 %v1121_v37 }
 0x321   : > { %v1123_v42 = vmul.f32 1.442695, %v1111_v40  ;;  %v1112_v43 = vsub.f32 %v1079_v21, %v1100_v41 }
 0x322   : > { %v1103_v44 = vpop.xlane.xlu0 %1102 }
 0x323   : > { %1758 = vpow2.f32 %v1123_v42  ;;  %v1125_v45 = vmul.f32 1.442695, %v1112_v43  ;;  %v1113_v46 = vsub.f32 %v1080_v22, %v1103_v44 }
 0x324   : > { %v1106_v47 = vpop.xlane.xlu1 %1105 }
 0x325   : > { %v1751_v48 = vpop.eup %1750  ;;  %1760 = vpow2.f32 %v1125_v45  ;;  %v1127_v49 = vmul.f32 1.442695, %v1113_v46  ;;  %v1114_v50 = vsub.f32 %v1081_v24, %v1106_v47 }
 0x326   : > { %v1131_v51 = vsel %vm1082_vm1, %v1751_v48, 0.0  ;;  %v1753_v52 = vpop.eup %1752 }
 0x327   : > { %1762 = vpow2.f32 %v1127_v49  ;;  %v1129_v53 = vmul.f32 1.442695, %v1114_v50  ;;  %1132 = vadd.xlane.f32.xlu0 %v1131_v51  ;;  %v1137_v55 = vsel %vm1082_vm1, %v1753_v52, 0.0 }
 0x329   : > { %v1755_v54 = vpop.eup %1754  ;;  %1764 = vpow2.f32 %v1129_v53 }
 0x32a   : > { %v1134_v56 = vsel %vm1082_vm1, %v1755_v54, 0.0  ;;  %v1757_v57 = vpop.eup %1756 }
 0x32b   : > { %1138 = vadd.xlane.f32.xlu0 %v1137_v55  ;;  %1135 = vadd.xlane.f32.xlu1 %v1134_v56  ;;  %v1140_v60 = vsel %vm1082_vm1, %v1757_v57, 0.0 }
 0x32d   : > { %v1759_v58 = vpop.eup %1758 }
 0x32e   : > { %v1143_v59 = vsel %vm1082_vm1, %v1759_v58, 0.0 }
 0x32f   : > { %v1761_v61 = vpop.eup %1760  ;;  %1144 = vadd.xlane.f32.xlu0 %v1143_v59  ;;  %1141 = vadd.xlane.f32.xlu1 %v1140_v60 }
 0x330   : > { %v1146_v0 = vsel %vm1082_vm1, %v1761_v61, 0.0 }
 0x331   : > { %v1763_v62 = vpop.eup %1762 }
 0x332   : > { %v1149_v63 = vsel %vm1082_vm1, %v1763_v62, 0.0 }
 0x333   : > { %v1765_v1 = vpop.eup %1764  ;;  %1150 = vadd.xlane.f32.xlu0 %v1149_v63  ;;  %1147 = vadd.xlane.f32.xlu1 %v1146_v0 }
 0x334   : > { %v1152_v2 = vsel %vm1082_vm1, %v1765_v1, 0.0 }
 0x337   : > { %1153 = vadd.xlane.f32.xlu1 %v1152_v2 }
 0x3b4   : > { %v1133_v3 = vpop.xlane.xlu0 %1132 }
 0x3b5   : > { %1766 = vrcp.f32 %v1133_v3 }
 0x3b8   : > { %v1139_v4 = vpop.xlane.xlu0 %1138  ;;  %v1136_v5 = vpop.xlane.xlu1 %1135 }
 0x3b9   : > { %1768 = vrcp.f32 %v1136_v5 }
 0x3ba   : > { %1770 = vrcp.f32 %v1139_v4 }
 0x3bc   : > { %v1145_v6 = vpop.xlane.xlu0 %1144  ;;  %v1142_v7 = vpop.xlane.xlu1 %1141 }
 0x3bd   : > { %1772 = vrcp.f32 %v1142_v7 }
 0x3be   : > { %1774 = vrcp.f32 %v1145_v6 }
 0x3bf   : > { %v1767_v10 = vpop.eup %1766 }
 0x3c0   : > { %v1151_v8 = vpop.xlane.xlu0 %1150  ;;  %v1148_v9 = vpop.xlane.xlu1 %1147  ;;  %v1163_v13 = vmul.f32 %v1767_v10, %v1751_v48 }
 0x3c1   : > { %1776 = vrcp.f32 %v1148_v9 }
 0x3c2   : > { %1778 = vrcp.f32 %v1151_v8 }
 0x3c3   : > { %v1769_v11 = vpop.eup %1768 }
 0x3c4   : > { %v1154_v12 = vpop.xlane.xlu1 %1153  ;;  %v1164_v14 = vmul.f32 %v1769_v11, %v1755_v54  ;;  %v1771_v15 = vpop.eup %1770 }
 0x3c5   : > { %1780 = vrcp.f32 %v1154_v12  ;;  %v1165_v18 = vmul.f32 %v1771_v15, %v1753_v52 }
 0x3c6   : > { %v1171_v16 = vpack.c.bf16 %v1164_v14, %v1163_v13 }
 0x3c7   : > { %v1773_v17 = vpop.eup %1772 }
 0x3c8   : > { %v1166_v19 = vmul.f32 %v1773_v17, %v1757_v57  ;;  %1563 = vmatprep.mubr.msk.bf16.mxu1 %vm1082_vm1, %v1171_v16  ;;  %v1775_v20 = vpop.eup %1774 }
 0x3c9   : > { %v1167_v24 = vmul.f32 %v1775_v20, %v1759_v58 }
 0x3ca   : > { %v1172_v21 = vpack.c.bf16 %v1166_v19, %v1165_v18 }
 0x3cb   : > { %v1777_v22 = vpop.eup %1776 }
 0x3cc   : > { %v1779_v23 = vpop.eup %1778  ;;  %1564 = vmatmul.mubr.msk.bf16.vlgmr.msra.gmra.mrb[32].mxu1 %vm1082_vm1, %v1172_v21  ;;  %v1168_v25 = vmul.f32 %v1777_v22, %v1761_v61 }
 0x3cd   : > { %v1169_v28 = vmul.f32 %v1779_v23, %v1763_v62 }
 0x3ce   : > { %v1173_v27 = vpack.c.bf16 %v1168_v25, %v1167_v24 }
 0x3cf   : > { %v1781_v26 = vpop.eup %1780 }
 0x3d0   : > { %v1170_v29 = vmul.f32 %v1781_v26, %v1765_v1  ;;  %1567 = vmatprep.mubr.msk.bf16.mxu1 %vm1082_vm1, %v1173_v27 }
 0x3d2   : > { %v1174_v30 = vpack.c.bf16 %v1170_v29, %v1169_v28 }
 0x3d4   : > { %1568 = vmatmul.mubr.msk.bf16.gmra.mrb[36].mxu1 %vm1082_vm1, %v1174_v30 }
 0x49f   : > { %v1565_v31 = vpop.f32.mrb[32].mxu1 }
 0x4a0   : > { %1254 = vst [vmem:[%s176_s17 + $0x10] sm:$0xff] %v1565_v31  ;;  %v1221_v32 = vpop.f32.mrb[33].mxu1 }
 0x4a1   : > { %1252 = vst [vmem:[%s176_s17] sm:$0xff] %v1221_v32  ;;  %v1566_v33 = vpop.f32.mrb[34].mxu1 }
 0x4a2   : > { %1255 = vst [vmem:[%s176_s17 + $0x18] sm:$0xff] %v1566_v33  ;;  %v1224_v34 = vpop.f32.mrb[35].mxu1 }
 0x4a3   : > { %1253 = vst [vmem:[%s176_s17 + $0x8] sm:$0xff] %v1224_v34 }
 0x4a7   : > { %v1569_v35 = vpop.f32.mrb[36].mxu1 }
 0x4a8   : > { %1258 = vst [vmem:[%s176_s17 + $0x30] sm:$0xff] %v1569_v35  ;;  %v1237_v36 = vpop.f32.mrb[37].mxu1 }
 0x4a9   : > { %1256 = vst [vmem:[%s176_s17 + $0x20] sm:$0xff] %v1237_v36  ;;  %v1570_v37 = vpop.f32.mrb[38].mxu1 }
 0x4aa   : > { %1259 = vst [vmem:[%s176_s17 + $0x38] sm:$0xff] %v1570_v37  ;;  %v1240_v38 = vpop.f32.mrb[39].mxu1 }
 0x4ab   : > { %1257 = vst [vmem:[%s176_s17 + $0x28] sm:$0xff] %v1240_v38 }
 0x4ac   : > { %1853 = shalt.err (!%p1850_p7)
}
 0x4ad   : > { %s1854_s24 = scalar_lea.hbm %s2141_s4, 1024  ;;  %s1858_s26 = scalar_lea.hbm %s2187_s2, 2048 }
 0x4ae   : > { %p1855_p9 = scmp.ne.s32.totalorder %s2141_s4, %s1854_s24  ;;  %p1859_p5 = scmp.lt.u32.totalorder %s2141_s4, %s2187_s2 }
 0x4af   : > { %p1860_p11 = scmp.lt.u32.totalorder %s1858_s26, %s1854_s24  ;;  %p1862_p4 = scmp.lt.u32.totalorder %s1854_s24, %s2141_s4 }
 0x4b0   : > { %p1856_p2 = pnand %p1855_p9, %p2028_p12 }
 0x4b1   : > { %p1861_p1 = por %p1860_p11, %p1859_p5 }
 0x4b2   : > { %p1857_p0 = pneg %p1856_p2 }
 0x4b3   : > { %p1863_p6 = por %p1862_p4, %p1861_p1 }
 0x4b5   : > { %p1864_p8 = pnand %p1863_p6, %p1857_p0 }
 0x4b7   : > { %1867 = shalt.err (!%p1864_p8)
}
 0x4b8   : > { %s1920_s3 = smov 128   ;;  %s1921_s15 = smov 8  }
 0x4b9   : > { %1596 = dma.vmem_to_hbm [thread:$0]  (%p2028_p12), %s2136_s27, 1024, %s2141_s4, %s1261_s5, %s1920_s3, %s1920_s3, %s1921_s15  }
 0x4ba PF: > { %s1289_s17 = sand.u32 1, %s1898_s9   ;;  %p2202_p10 = scmp.ne.s32.totalorder %s2192_s16, 0 }
 0x4bb   : > { %p2203_p13 = scmp.ge.s32.totalorder %s1910_s12, 2  ;;  %s1290_s19 = scalar_lea.sflag [#allocation4], %s1289_s17 }
 0x4bd   : > { %p1607_p3 = pnand %p2203_p13, %p2202_p10 }
 0x4bf   : > { %1893 = dma.done.wait (!%p1607_p3), %s1290_s19, 1024  }
 0x4c0   : > { %1895 = vsyncadd (!%p1607_p3), %s1290_s19, 4294966272  ;;  %p16_p7 = scmp.ge.s32.totalorder %s1993_s21, 4   ;;  %s2204_s9 = smov %s1902_s10 }
 0x4c1   : > { %s2205_s10 = smov %s1906_s11  ;;  %s2206_s11 = smov %s2024_s8 }
 0x4c2   : > { %s2207_s12 = smov %s1993_s21  ;;  %18 = sbr.rel (!%p16_p7) target bundleno = 6 (0x6), region = 77 }
 0x4c9   :  { %1295 = vsyncpa [#allocation3], 1 }
 0x4ca   :  { %1297 = vsyncpa [#allocation3 + $0x1], 1 }
 0x4cb   :  { %1298 = vsyncpa [#allocation6], 1 }
 0x4cc   :  { %1299 = vsyncpa [#allocation4], 1 }
 0x4cd   :  { %1301 = vsyncpa [#allocation4 + $0x1], 1 }

</bundles_post_ra>
